<compile_context>
chip_gen: v5e
topology: v5e:2x2
jax: 0.10.0
libtpu: 0.0.40
codegen_flags: <defaults>
</compile_context>

<pallas_src>
from math import pi
from functools import partial

import jax
import jax.numpy as jnp
from jax import lax
from jax.experimental import pallas as pl
from jax.experimental.pallas import tpu as pltpu


def _bessel_rbf_kernel(x_ref, o_ref, *, n_rbf: int, freq_scale: float):
    # x_ref: (1, tile_e)        distances (lane-dense)
    # o_ref: (n_rbf, tile_e)    transposed basis values (lane-dense)
    x = x_ref[...]                                            # (1, tile_e)

    # freqs = (k+1) * pi / cutoff, generated in-kernel (no streamed input).
    k = lax.broadcasted_iota(jnp.int32, (n_rbf, 1), 0).astype(jnp.float32)
    freqs = (k + 1.0) * jnp.float32(freq_scale)               # (n_rbf, 1)

    ax = freqs * x                                            # (n_rbf, tile_e)
    sinax = jnp.sin(ax)

    # One exact reciprocal per distance (not per output element).
    inv = jnp.float32(1.0) / jnp.where(x == 0.0, jnp.float32(1.0), x)  # (1, tile_e)

    o_ref[...] = sinax * inv                                  # broadcast multiply


def bessel_rbf(inputs: jax.Array, n_rbf: int, cutoff: float, *, tile_e_max: int = 8192):
    """Pallas implementation of BesselRBF.forward.

    inputs: float32 array of arbitrary shape (distances).
    returns: float32 array of shape (*inputs.shape, n_rbf).
    """
    inputs = inputs.astype(jnp.float32)
    orig_shape = inputs.shape
    x_flat = inputs.reshape(-1)
    n = x_flat.shape[0]

    # Lane-dense tiling: tile_e is a multiple of 128, adapted to problem size
    # so tiny inputs don't pad up to the full max tile.
    assert tile_e_max % 128 == 0
    n_min = pl.cdiv(max(n, 1), 128) * 128
    tile_e = min(tile_e_max, n_min)
    n_pad = pl.cdiv(max(n, 1), tile_e) * tile_e

    # Pad the flattened edge dimension; padding rows give sin(0)*1 = 0 and
    # are sliced off below.
    x_padded = jnp.zeros((n_pad,), jnp.float32).at[:n].set(x_flat)
    x2d = x_padded.reshape(1, n_pad)

    grid = (n_pad // tile_e,)
    kernel = partial(_bessel_rbf_kernel, n_rbf=n_rbf, freq_scale=pi / cutoff)

    out_t = pl.pallas_call(
        kernel,
        out_shape=jax.ShapeDtypeStruct((n_rbf, n_pad), jnp.float32),
        grid_spec=pltpu.PrefetchScalarGridSpec(
            num_scalar_prefetch=0,
            grid=grid,
            in_specs=[
                pl.BlockSpec((1, tile_e), lambda i: (0, i)),
            ],
            out_specs=pl.BlockSpec((n_rbf, tile_e), lambda i: (0, i)),
        ),
        compiler_params=pltpu.CompilerParams(
            dimension_semantics=("parallel",),
        ),
    )(x2d)

    # (n_rbf, n_pad) -> (n, n_rbf) -> (*inputs.shape, n_rbf).
    # TODO(synk): a fused downstream consumer could take the transposed
    # (n_rbf, N) slab directly and skip this layout-plumbing transpose.
    return out_t[:, :n].T.reshape(*orig_shape, n_rbf)


def bessel_rbf_ref(inputs, n_rbf, cutoff):
    """Pure-JAX reference matching the PyTorch module exactly."""
    freqs = jnp.arange(1, n_rbf + 1, dtype=jnp.float32) * (pi / cutoff)
    ax = inputs[..., None] * freqs
    sinax = jnp.sin(ax)
    norm = jnp.where(inputs == 0.0, 1.0, inputs)
    return sinax / norm[..., None]


if __name__ == "__main__":
    n_rbf = 8
    cutoff = 5.0

    key = jax.random.PRNGKey(0)
    # "Distances" for e.g. 2 molecules x 128 edges; include exact zeros to
    # exercise the norm == 1 branch.
    d = jax.random.uniform(key, (2, 128), dtype=jnp.float32, minval=0.0, maxval=cutoff)
    d = d.at[0, 0].set(0.0)
    d = d.at[1, 7].set(0.0)

    y = jax.block_until_ready(bessel_rbf(d, n_rbf, cutoff))
    y_ref = bessel_rbf_ref(d, n_rbf, cutoff)
    assert y.shape == (2, 128, n_rbf), y.shape
    assert jnp.allclose(y, y_ref, atol=1e-5, rtol=1e-5), float(jnp.max(jnp.abs(y - y_ref)))

    # Second case: non-multiple-of-128 edge count with a tiny tile to force a
    # multi-step grid + padding path.
    key2 = jax.random.PRNGKey(1)
    d2 = jax.random.uniform(key2, (3, 100), dtype=jnp.float32, minval=0.0, maxval=cutoff)
    d2 = d2.at[2, 5].set(0.0)
    y2 = jax.block_until_ready(bessel_rbf(d2, n_rbf, cutoff, tile_e_max=128))
    y2_ref = bessel_rbf_ref(d2, n_rbf, cutoff)
    assert y2.shape == (3, 100, n_rbf), y2.shape
    assert jnp.allclose(y2, y2_ref, atol=1e-5, rtol=1e-5), float(jnp.max(jnp.abs(y2 - y2_ref)))

    print("KERNEL_OK")
</pallas_src>

<mosaic_0001>
module attributes {stable_mosaic.version = 11 : i64} {
  func.func @_bessel_rbf_kernel(%arg0: i32, %arg1: memref<1x256xf32, #tpu.memory_space<vmem>>, %arg2: memref<8x256xf32, #tpu.memory_space<vmem>>) attributes {dimension_semantics = [#tpu.dimension_semantics<parallel>], iteration_bounds = array<i64: 1>, scalar_prefetch = 0 : i64, scratch_operands = 0 : i64, tpu.core_type = #tpu.core_type<tc>, window_params = [{transform_indices = @transform_0, window_bounds = array<i64: 1, 256>}, {transform_indices = @transform_1, window_bounds = array<i64: 8, 256>}]} {
    %c0 = arith.constant 0 : index
    %c0_0 = arith.constant 0 : index
    %0 = vector.load %arg1[%c0, %c0_0] : memref<1x256xf32, #tpu.memory_space<vmem>>, vector<1x256xf32>
    %1 = tpu.iota {dimensions = array<i32: 0>} : vector<8x1xi32>
    %2 = arith.sitofp %1 : vector<8x1xi32> to vector<8x1xf32>
    %cst = arith.constant 1.000000e+00 : f32
    %3 = vector.broadcast %cst : f32 to vector<8x1xf32>
    %4 = arith.addf %2, %3 : vector<8x1xf32>
    %cst_1 = arith.constant 0.628318548 : f32
    %5 = vector.broadcast %cst_1 : f32 to vector<8x1xf32>
    %6 = arith.mulf %4, %5 : vector<8x1xf32>
    %7 = vector.broadcast %6 : vector<8x1xf32> to vector<8x256xf32>
    %8 = vector.broadcast %0 : vector<1x256xf32> to vector<8x256xf32>
    %9 = arith.mulf %7, %8 : vector<8x256xf32>
    %10 = math.sin %9 : vector<8x256xf32>
    %cst_2 = arith.constant 0.000000e+00 : f32
    %11 = vector.broadcast %cst_2 : f32 to vector<1x256xf32>
    %12 = arith.cmpf oeq, %0, %11 : vector<1x256xf32>
    %cst_3 = arith.constant 1.000000e+00 : f32
    %13 = vector.broadcast %cst_3 : f32 to vector<1x256xf32>
    %14 = arith.select %12, %13, %0 : vector<1x256xi1>, vector<1x256xf32>
    %cst_4 = arith.constant 1.000000e+00 : f32
    %15 = vector.broadcast %cst_4 : f32 to vector<1x256xf32>
    %16 = arith.divf %15, %14 : vector<1x256xf32>
    %17 = vector.broadcast %16 : vector<1x256xf32> to vector<8x256xf32>
    %18 = arith.mulf %10, %17 : vector<8x256xf32>
    %c0_5 = arith.constant 0 : index
    %c0_6 = arith.constant 0 : index
    %19 = vector.load %arg2[%c0_5, %c0_6] : memref<8x256xf32, #tpu.memory_space<vmem>>, vector<8x256xf32>
    tpu.vector_store %arg2[%c0_5, %c0_6], %18 {strides = array<i32>} : memref<8x256xf32, #tpu.memory_space<vmem>>, vector<8x256xf32>,
    return
  }
  func.func @transform_0(%arg0: i32) -> (i32, i32) {
    %c0_i32 = arith.constant 0 : i32
    %c0_i32_0 = arith.constant 0 : i32
    return %c0_i32, %arg0 : i32, i32
  }
  func.func @transform_1(%arg0: i32) -> (i32, i32) {
    %c0_i32 = arith.constant 0 : i32
    %c0_i32_0 = arith.constant 0 : i32
    return %c0_i32, %arg0 : i32, i32
  }
}

</mosaic_0001>

<bundles_post_ra>
// kernel: tpu_custom_call.1
= control target key start
LH: loop header
LB: loop body
LE: loop exit
PB: predicated region body
PF: predicated region fallthrough
CT: control target
= control target key end

     0   :  { %6 = vsyncpa [#allocation3], 0  ;;  %s672_s0 = inlined_call_operand.hbm [shape: f32[1,256], index: 0, kind: input, shape index: {}]   ;;  %s673_s1 = inlined_call_operand.hbm [shape: f32[8,256], index: 1, kind: output, shape index: {}]  }
   0x1   :  { %7 = vsyncpa [#allocation4], 0  ;;  %s13_s8 = sshll.u32 %s672_s0, 4  ;;  %s458_s9 = smov [#allocation2]   ;;  %s14_s8 = int_to_ptr.hbm [resolvable:$true] %s13_s8 }
   0x2   :  { %s15_s10 = sshll.u32 %s458_s9, 4  ;;  %s16_s10 = int_to_ptr.vmem [resolvable:$true] %s15_s10 }
   0x3   :  { %18 = dma.hbm_to_vmem [thread:$0]  %s14_s8, 32, %s16_s10, [#allocation3]  }
   0x4   :  { %454 = dma.done.wait [#allocation3], 32  }
   0x5   :  { %455 = vsyncadd [#allocation3], 4294967264  ;;  %v24_v0 = vlaneseq  ;;  %v480_v4 = vld [vmem:[#allocation2] sm:$0x3]  ;;  %v459_v31 = vmov 683565275  }
   0x6   :  { %v30_v6 = vperm.slane %v480_v4, 0  ;;  %v31_v7 = vperm.slane %v480_v4, 1  ;;  %v460_v33 = vmov 2475754826   ;;  %v461_v35 = vmov 2131351028  }
   0x7   :  { %v25_v1 = vshrl.u32 %v24_v0, 7  ;;  %v462_v37 = vmov 2102212464   ;;  %v463_v39 = vmov 920167782   ;;  %s466_s0 = smov [#allocation5]  }
   0x8   :  { %v464_v48 = vmov 1326507024   ;;  %s377_s11 = sshll.u32 %s466_s0, 4  ;;  %s379_s14 = sshll.u32 %s673_s1, 4  ;;  %s378_s11 = int_to_ptr.vmem [resolvable:$true] %s377_s11  ;;  %s380_s14 = int_to_ptr.hbm [resolvable:$true] %s379_s14 }
   0x9   :  { %v26_v2 = vcvt.s32.f32 %v25_v1 }
   0xb   :  { %v27_v3 = vadd.f32 1.0, %v26_v2 }
   0xd   :  { %v28_v5 = vmul.f32 0.62831855, %v27_v3 }
   0xf   :  { %v484_v8 = vmul.f32 %v30_v6, %v28_v5  ;;  %v486_v9 = vmul.f32 %v31_v7, %v28_v5 }
  0x11   :  { %v36_v10 = vand.u32 2147483647, %v484_v8  ;;  %v39_v11 = vand.u32 2139095040, %v484_v8  ;;  %v191_v12 = vand.u32 2147483647, %v486_v9  ;;  %v194_v13 = vand.u32 2139095040, %v486_v9 }
  0x13   :  { %v40_v14 = vshrl.u32 %v39_v11, 23  ;;  %v43_v15 = vand.u32 8388607, %v36_v10  ;;  %v195_v16 = vshrl.u32 %v194_v13, 23  ;;  %v198_v20 = vand.u32 8388607, %v191_v12 }
  0x15   :  { %v389_v17 = vadd.s32 4294967169, %v40_v14  ;;  %v44_v18 = vor.u32 8388608, %v43_v15  ;;  %v392_v19 = vadd.s32 4294967169, %v195_v16  ;;  %v199_v25 = vor.u32 8388608, %v198_v20 }
  0x17   :  { %v46_v21 = vadd.s32 1, %v389_v17  ;;  %v201_v22 = vadd.s32 1, %v392_v19  ;;  %v496_v24 = vshll.u32 %v44_v18, 8  ;;  %v506_v42 = vshll.u32 %v199_v25, 8 }
  0x19   :  { %vm47_vm0 = vcmp.gt.s32.totalorder %v46_v21, 0  ;;  %vm202_vm1 = vcmp.gt.s32.totalorder %v201_v22, 0  ;;  %v85_v41 = vand.u32 65535, %v496_v24  ;;  %v86_v46 = vshrl.u32 %v496_v24, 16 }
  0x1a   :  { %v48_v23 = vsel %vm47_vm0, %v46_v21, 0  ;;  %v203_v27 = vsel %vm202_vm1, %v201_v22, 0 }
  0x1b   :  { %v50_v26 = vand.u32 31, %v48_v23  ;;  %v498_v28 = vshrl.u32 %v48_v23, 5  ;;  %v500_v29 = vand.u32 31, %v203_v27  ;;  %v524_v59 = vshrl.u32 %v203_v27, 5 }
  0x1d   :  { %v51_v30 = vsub.s32 32, %v50_v26  ;;  %v53_v32 = vshll.u32 %v459_v31, %v50_v26  ;;  %v56_v34 = vshll.u32 %v460_v33, %v50_v26  ;;  %v59_v36 = vshll.u32 %v461_v35, %v50_v26 }
  0x1e   :  { %v62_v38 = vshll.u32 %v462_v37, %v50_v26  ;;  %v65_v40 = vshll.u32 %v463_v39, %v50_v26  ;;  %vm68_vm2 = vcmp.lt.s32.totalorder %v498_v28, 1  ;;  %vm71_vm3 = vcmp.lt.s32.totalorder %v498_v28, 4 }
  0x1f   :  { %v54_v43 = vshrl.u32 %v460_v33, %v51_v30  ;;  %v57_v44 = vshrl.u32 %v461_v35, %v51_v30  ;;  %v60_v45 = vshrl.u32 %v462_v37, %v51_v30  ;;  %v63_v47 = vshrl.u32 %v463_v39, %v51_v30 }
  0x20   :  { %v66_v49 = vshrl.u32 %v464_v48, %v51_v30  ;;  %v515_v53 = vsub.s32 32, %v500_v29  ;;  %v52_v54 = vshrl.u32 %v459_v31, %v51_v30  ;;  %vm70_vm4 = vcmp.lt.s32.totalorder %v498_v28, 3 }
  0x21   :  { %v55_v50 = vor.u32 %v54_v43, %v53_v32  ;;  %v58_v51 = vor.u32 %v57_v44, %v56_v34  ;;  %v61_v52 = vor.u32 %v60_v45, %v59_v36  ;;  %v64_v55 = vor.u32 %v63_v47, %v62_v38 }
  0x22   :  { %v67_v56 = vor.u32 %v66_v49, %v65_v40  ;;  %vm69_vm5 = vcmp.lt.s32.totalorder %v498_v28, 2  ;;  %v208_v62 = vshll.u32 %v459_v31, %v500_v29  ;;  %v211_v63 = vshll.u32 %v460_v33, %v500_v29 }
  0x23   :  { %v76_v57 = vsel %vm68_vm2, %v55_v50, %v58_v51  ;;  %v80_v58 = vsel %vm68_vm2, %v58_v51, %v61_v52  ;;  %v77_v60 = vsel %vm71_vm3, %v64_v55, 920167782  ;;  %v73_v0 = vsel %vm71_vm3, %v61_v52, 2102212464 }
  0x24   :  { %v81_v61 = vsel %vm71_vm3, %v67_v56, 1326507024  ;;  %v78_v1 = vsel %vm70_vm4, %v61_v52, %v77_v60  ;;  %v209_v3 = vshrl.u32 %v460_v33, %v515_v53  ;;  %v72_v5 = vsel %vm68_vm2, %v52_v54, %v55_v50 }
  0x25   :  { %v82_v2 = vsel %vm70_vm4, %v64_v55, %v81_v61  ;;  %v79_v6 = vsel %vm69_vm5, %v76_v57, %v78_v1  ;;  %v212_v11 = vshrl.u32 %v461_v35, %v515_v53  ;;  %v74_v17 = vsel %vm70_vm4, %v58_v51, %v73_v0 }
  0x26   :  { %v83_v7 = vsel %vm69_vm5, %v80_v58, %v82_v2  ;;  %v109_v15 = vand.u32 65535, %v79_v6  ;;  %v110_v16 = vshrl.u32 %v79_v6, 16  ;;  %v549_v18 = vor.u32 %v209_v3, %v208_v62 }
  0x27   :  { %v87_v13 = vand.u32 65535, %v83_v7  ;;  %v88_v14 = vshrl.u32 %v83_v7, 16  ;;  %v551_v19 = vor.u32 %v212_v11, %v211_v63  ;;  %v214_v20 = vshll.u32 %v461_v35, %v500_v29 }
  0x28   :  { %v215_v25 = vshrl.u32 %v462_v37, %v515_v53  ;;  %v111_v27 = vmul.u32 %v109_v15, %v85_v41  ;;  %v112_v30 = vmul.u32 %v110_v16, %v85_v41  ;;  %v113_v32 = vmul.u32 %v109_v15, %v86_v46 }
  0x29   :  { %v89_v21 = vmul.u32 %v87_v13, %v85_v41  ;;  %v90_v22 = vmul.u32 %v88_v14, %v85_v41  ;;  %v91_v23 = vmul.u32 %v87_v13, %v86_v46  ;;  %v92_v26 = vmul.u32 %v88_v14, %v86_v46 }
  0x2a   :  { %v114_v38 = vmul.u32 %v110_v16, %v86_v46  ;;  %v115_v43 = vshll.u32 %v112_v30, 16  ;;  %v116_v44 = vshrl.u32 %v112_v30, 16  ;;  %v117_v45 = vshll.u32 %v113_v32, 16 }
  0x2b   :  { %v93_v33 = vshll.u32 %v90_v22, 16  ;;  %v94_v34 = vshrl.u32 %v90_v22, 16  ;;  %v95_v36 = vshll.u32 %v91_v23, 16  ;;  %v96_v40 = vshrl.u32 %v91_v23, 16 }
  0x2c   :  { %v118_v47 = vshrl.u32 %v113_v32, 16  ;;  %v217_v49 = vshll.u32 %v462_v37, %v500_v29  ;;  %v465_v50 = vmov 0   ;;  %vm119_vm7 = vc.u32 %v111_v27, %v115_v43 }
  0x2d   :  { %vm97_vm6 = vc.u32 %v89_v21, %v93_v33  ;;  %v99_v35 = vadd.s32 %v93_v33, %v89_v21  ;;  %v121_v41 = vadd.s32 %v115_v43, %v111_v27  ;;  %v218_v52 = vshrl.u32 %v463_v39, %v515_v53 }
  0x2e   :  { %v98_v51 = vsel %vm97_vm6, 1, %v465_v50  ;;  %v120_v46 = vsel %vm119_vm7, 1, %v465_v50  ;;  %v220_v55 = vshll.u32 %v463_v39, %v500_v29  ;;  %v216_v37 = vor.u32 %v215_v25, %v214_v20 }
  0x2f   :  { %v100_v54 = vadd.s32 %v98_v51, %v92_v26  ;;  %vm101_vm8 = vc.u32 %v99_v35, %v95_v36  ;;  %v122_v57 = vadd.s32 %v120_v46, %v114_v38  ;;  %vm123_vm9 = vc.u32 %v121_v41, %v117_v45 }
  0x30   :  { %v102_v56 = vsel %vm101_vm8, 1, %v465_v50  ;;  %v124_v60 = vsel %vm123_vm9, 1, %v465_v50  ;;  %v219_v61 = vor.u32 %v218_v52, %v217_v49  ;;  %v221_v62 = vshrl.u32 %v464_v48, %v515_v53 }
  0x31   :  { %v104_v58 = vadd.s32 %v102_v56, %v100_v54  ;;  %v568_v63 = vadd.s32 %v121_v41, %v117_v45  ;;  %v126_v0 = vadd.s32 %v124_v60, %v122_v57  ;;  %vm223_vm10 = vcmp.lt.s32.totalorder %v524_v59, 1 }
  0x32   :  { %vm225_vm11 = vcmp.lt.s32.totalorder %v524_v59, 3  ;;  %v222_v39 = vor.u32 %v221_v62, %v220_v55  ;;  %vm224_vm12 = vcmp.lt.s32.totalorder %v524_v59, 2  ;;  %vm226_vm13 = vcmp.lt.s32.totalorder %v524_v59, 4 }
  0x33   :  { %v105_v29 = vadd.s32 %v104_v58, %v94_v34  ;;  %v75_v1 = vsel %vm69_vm5, %v72_v5, %v74_v17  ;;  %v127_v2 = vadd.s32 %v126_v0, %v116_v44  ;;  %v231_v48 = vsel %vm223_vm10, %v549_v18, %v551_v19 }
  0x34   :  { %v232_v3 = vsel %vm226_vm13, %v219_v61, 920167782  ;;  %v235_v11 = vsel %vm223_vm10, %v551_v19, %v216_v37  ;;  %v240_v28 = vand.u32 65535, %v506_v42  ;;  %v236_v14 = vsel %vm226_vm13, %v222_v39, 1326507024 }
  0x35   :  { %v582_v6 = vadd.s32 %v105_v29, %v96_v40  ;;  %v233_v7 = vsel %vm225_vm11, %v216_v37, %v232_v3  ;;  %v128_v5 = vadd.s32 %v127_v2, %v118_v47  ;;  %v241_v15 = vshrl.u32 %v506_v42, 16 }
  0x36   :  { %v234_v13 = vsel %vm224_vm12, %v231_v48, %v233_v7  ;;  %v129_v16 = vmul.u32 %v496_v24, %v75_v1  ;;  %v237_v17 = vsel %vm225_vm11, %v219_v61, %v236_v14  ;;  %v207_v30 = vshrl.u32 %v459_v31, %v515_v53 }
  0x37   :  { %vm131_vm14 = vc.u32 %v582_v6, %v568_v63  ;;  %v264_v20 = vand.u32 65535, %v234_v13  ;;  %v132_v21 = vadd.s32 1, %v128_v5  ;;  %v238_v22 = vsel %vm224_vm12, %v235_v11, %v237_v17 }
  0x38   :  { %v265_v23 = vshrl.u32 %v234_v13, 16  ;;  %v242_v25 = vand.u32 65535, %v238_v22  ;;  %v243_v26 = vshrl.u32 %v238_v22, 16  ;;  %v228_v45 = vsel %vm226_vm13, %v216_v37, 2102212464 }
  0x39   :  { %v133_v27 = vsel %vm131_vm14, %v132_v21, %v128_v5  ;;  %v268_v24 = vmul.u32 %v264_v20, %v241_v15  ;;  %v266_v38 = vmul.u32 %v264_v20, %v240_v28  ;;  %v227_v49 = vsel %vm223_vm10, %v207_v30, %v549_v18 }
  0x3a   :  { %v267_v32 = vmul.u32 %v265_v23, %v240_v28  ;;  %v134_v33 = vadd.s32 %v133_v27, %v129_v16  ;;  %v244_v34 = vmul.u32 %v242_v25, %v240_v28  ;;  %v245_v36 = vmul.u32 %v243_v26, %v240_v28 }
  0x3b   :  { %v246_v40 = vmul.u32 %v242_v25, %v241_v15  ;;  %v247_v35 = vmul.u32 %v243_v26, %v241_v15  ;;  %v269_v31 = vmul.u32 %v265_v23, %v241_v15  ;;  %v272_v53 = vshll.u32 %v268_v24, 16 }
  0x3c   :  { %v270_v43 = vshll.u32 %v267_v32, 16  ;;  %v135_v44 = vadd.s32 536870912, %v134_v33  ;;  %v248_v47 = vshll.u32 %v245_v36, 16  ;;  %v229_v54 = vsel %vm225_vm11, %v551_v19, %v228_v45 }
  0x3d   :  { %v250_v51 = vshll.u32 %v246_v40, 16  ;;  %v249_v18 = vshrl.u32 %v245_v36, 16  ;;  %v271_v60 = vshrl.u32 %v267_v32, 16  ;;  %v251_v0 = vshrl.u32 %v246_v40, 16 }
  0x3e   :  { %v609_v41 = vshrl.u32 %v135_v44, 30  ;;  %vm252_vm15 = vc.u32 %v244_v34, %v248_v47  ;;  %v254_v52 = vadd.s32 %v248_v47, %v244_v34  ;;  %vm274_vm0 = vc.u32 %v266_v38, %v270_v43 }
  0x3f   :  { %v253_v46 = vsel %vm252_vm15, 1, %v465_v50  ;;  %v275_v55 = vsel %vm274_vm0, 1, %v465_v50  ;;  %v276_v56 = vadd.s32 %v270_v43, %v266_v38  ;;  %v273_v39 = vshrl.u32 %v268_v24, 16 }
  0x40   :  { %v137_v57 = vshll.u32 %v609_v41, 30  ;;  %v255_v37 = vadd.s32 %v253_v46, %v247_v35  ;;  %vm256_vm1 = vc.u32 %v254_v52, %v250_v51  ;;  %v277_v61 = vadd.s32 %v275_v55, %v269_v31 }
  0x41   :  { %v257_v58 = vsel %vm256_vm1, 1, %v465_v50  ;;  %vm278_vm2 = vc.u32 %v276_v56, %v272_v53  ;;  %v280_v3 = vadd.s32 %v276_v56, %v272_v53  ;;  %v230_v7 = vsel %vm224_vm12, %v227_v49, %v229_v54 }
  0x42   :  { %v138_v62 = vsub.s32 %v134_v33, %v137_v57  ;;  %v259_v29 = vadd.s32 %v257_v58, %v255_v37  ;;  %v279_v19 = vsel %vm278_vm2, 1, %v465_v50  ;;  %v284_v15 = vmul.u32 %v506_v42, %v230_v7 }
  0x43   :  { %v281_v1 = vadd.s32 %v279_v19, %v277_v61  ;;  %v130_v50 = vadd.s32 %v568_v63, %v582_v6  ;;  %vm346_vm6 = vcmp.eq.f32.partialorder %v480_v4, 0.0  ;;  %v160_v44 = vsub.s32 4, %v609_v41 }
  0x44   :  { %vm139_vm3 = vcmp.lt.s32.totalorder %v138_v62, 0  ;;  %v140_v2 = vsub.s32 0, %v138_v62  ;;  %v260_v48 = vadd.s32 %v259_v29, %v249_v18  ;;  %v347_v33 = vsel %vm346_vm6, 1.0, %v480_v4 }
  0x45   :  { %v282_v11 = vadd.s32 %v281_v1, %v271_v60  ;;  %404 = vrcp.f32 %v347_v33  ;;  %vm38_vm8 = vcmp.lt.s32.totalorder %v484_v8, 0  ;;  %vm633_vm9 = vcmp.le.f32.partialorder %v36_v10, 0.7853982 }
  0x46   :  { %v141_v28 = vsel %vm139_vm3, %v140_v2, %v138_v62  ;;  %v261_v5 = vadd.s32 %v260_v48, %v251_v0  ;;  %v161_v53 = vsel %vm38_vm8, %v160_v44, %v609_v41  ;;  %vm353_vm11 = vweird.f32 %v347_v33 }
  0x47   :  { %v142_v13 = vclz %v141_v28  ;;  %v283_v14 = vadd.s32 %v282_v11, %v273_v39  ;;  %v163_v10 = vsel %vm633_vm9, 0, %v161_v53  ;;  %v357_v28 = vand.u32 2147483647, %v347_v33 }
  0x48   :  { %vm286_vm4 = vc.u32 %v261_v5, %v280_v3  ;;  %v285_v56 = vadd.s32 %v280_v3, %v261_v5  ;;  %v180_v19 = vadd.s32 3, %v163_v10  ;;  %v359_v3 = vand.u32 2147483648, %v347_v33 }
  0x49   :  { %v390_v16 = vadd.s32 4294967294, %v142_v13  ;;  %v287_v17 = vadd.s32 1, %v283_v14  ;;  %vm358_vm14 = vcmp.eq.f32.partialorder %v357_v28, 8.507059e+37  ;;  %vm193_vm0 = vcmp.lt.s32.totalorder %v486_v9, 0 }
  0x4a   :  { %vm653_vm2 = vcmp.le.f32.partialorder %v191_v12, 0.7853982 }
  0x4b   :  { %vm391_vm5 = vcmp.lt.s32.totalorder %v390_v16, 0  ;;  %v288_v20 = vsel %vm286_vm4, %v287_v17, %v283_v14  ;;  %v405_v45 = vpop.eup %404  ;;  %vm179_vm4 = vweird.f32 %v484_v8 }
  0x4c   :  { %v145_v21 = vsel %vm391_vm5, 0, %v390_v16  ;;  %v289_v22 = vadd.s32 %v288_v20, %v284_v15  ;;  %v349_v51 = vmul.f32 %v405_v45, %v347_v33  ;;  %vm354_vm12 = vweird.f32 %v405_v45 }
  0x4d   :  { %v146_v23 = vsub.s32 32, %v145_v21  ;;  %v147_v59 = vshll.u32 %v138_v62, %v145_v21  ;;  %v150_v25 = vsub.s32 4294967266, %v145_v21  ;;  %vm643_vm13 = vmor %vm353_vm11, %vm354_vm12  ;;  %v181_v15 = vand.u32 3, %v180_v19 }
  0x4e   :  { %v290_v26 = vadd.s32 536870912, %v289_v22  ;;  %v350_v46 = vsub.f32 1.0, %v349_v51  ;;  %v360_v21 = vor.u32 1.1754944e-38, %v359_v3 }
  0x4f   :  { %v148_v27 = vshrl.u32 %v130_v50, %v146_v23  ;;  %v151_v30 = vadd.s32 127, %v150_v25  ;;  %vm186_vm15 = vcmp.eq.s32.totalorder %v181_v15, 2  ;;  %vm183_vm1 = vcmp.eq.s32.totalorder %v181_v15, 0 }
  0x50   :  { %v624_v32 = vshrl.u32 %v290_v26, 30  ;;  %v351_v62 = vmul.f32 %v405_v45, %v350_v46  ;;  %vm182_vm3 = vcmp.lt.s32.totalorder %v181_v15, 2 }
  0x51   :  { %v149_v42 = vor.u32 %v148_v27, %v147_v59  ;;  %v152_v24 = vshll.u32 %v151_v30, 23 }
  0x52   :  { %v292_v63 = vshll.u32 %v624_v32, 30  ;;  %v352_v11 = vadd.f32 %v405_v45, %v351_v62 }
  0x53   :  { %v153_v6 = vor.u32 4788187, %v152_v24  ;;  %v156_v34 = vcvt.s32.f32 %v149_v42  ;;  %v315_v42 = vsub.s32 4, %v624_v32 }
  0x54   :  { %v293_v36 = vsub.s32 %v289_v22, %v292_v63  ;;  %v356_v23 = vsel %vm643_vm13, %v405_v45, %v352_v11 }
  0x55   :  { %v154_v38 = vand.u32 2147483647, %v153_v6  ;;  %v361_v24 = vsel %vm358_vm14, %v360_v21, %v356_v23 }
  0x56   :  { %vm294_vm7 = vcmp.lt.s32.totalorder %v293_v36, 0  ;;  %v295_v40 = vsub.s32 0, %v293_v36  ;;  %v365_v62 = vperm.slane %v361_v24, 1 }
  0x57   :  { %v157_v43 = vmul.f32 %v156_v34, %v154_v38  ;;  %v364_v38 = vperm.slane %v361_v24, 0 }
  0x58   :  { %v296_v35 = vsel %vm294_vm7, %v295_v40, %v293_v36 }
  0x59   :  { %v158_v47 = vxor.u32 2147483648, %v157_v43  ;;  %v297_v49 = vclz %v296_v35 }
  0x5b   :  { %v159_v31 = vsel %vm38_vm8, %v158_v47, %v157_v43  ;;  %v393_v52 = vadd.s32 4294967294, %v297_v49  ;;  %v316_v43 = vsel %vm193_vm0, %v315_v42, %v624_v32  ;;  %vm334_vm8 = vweird.f32 %v486_v9 }
  0x5c   :  { %v162_v54 = vsel %vm633_vm9, %v484_v8, %v159_v31  ;;  %v318_v4 = vsel %vm653_vm2, 0, %v316_v43 }
  0x5d   :  { %v164_v55 = vmul.f32 %v162_v54, %v162_v54  ;;  %vm394_vm10 = vcmp.lt.s32.totalorder %v393_v52, 0  ;;  %v335_v53 = vadd.s32 3, %v318_v4 }
  0x5e   :  { %v300_v57 = vsel %vm394_vm10, 0, %v393_v52 }
  0x5f   :  { %v165_v18 = vmul.f32 -0.001358992, %v164_v55  ;;  %v172_v37 = vmul.f32 -0.00019511016, %v164_v55  ;;  %v301_v58 = vsub.s32 32, %v300_v57  ;;  %v302_v60 = vshll.u32 %v293_v36, %v300_v57 }
  0x60   :  { %v305_v61 = vsub.s32 4294967266, %v300_v57 }
  0x61   :  { %v166_v41 = vadd.f32 0.041655596, %v165_v18  ;;  %v173_v0 = vadd.f32 0.008332121, %v172_v37  ;;  %v303_v29 = vshrl.u32 %v285_v56, %v301_v58 }
  0x62   :  { %v306_v39 = vadd.s32 127, %v305_v61 }
  0x63   :  { %v167_v1 = vmul.f32 %v166_v41, %v164_v55  ;;  %v174_v2 = vmul.f32 %v173_v0, %v164_v55  ;;  %v304_v48 = vor.u32 %v303_v29, %v302_v60 }
  0x64   :  { %v307_v7 = vshll.u32 %v306_v39, 23 }
  0x65   :  { %v168_v5 = vadd.f32 -0.4999988, %v167_v1  ;;  %v175_v13 = vadd.f32 -0.16666654, %v174_v2  ;;  %v311_v17 = vcvt.s32.f32 %v304_v48 }
  0x66   :  { %v308_v16 = vor.u32 4788187, %v307_v7 }
  0x67   :  { %v169_v50 = vmul.f32 %v168_v5, %v164_v55  ;;  %v176_v20 = vmul.f32 %v175_v13, %v164_v55  ;;  %v336_v55 = vand.u32 3, %v335_v53 }
  0x68   :  { %v309_v22 = vand.u32 2147483647, %v308_v16 }
  0x69   :  { %v170_v59 = vadd.f32 1.0, %v169_v50  ;;  %v177_v25 = vadd.f32 1.0, %v176_v20  ;;  %vm341_vm5 = vcmp.eq.s32.totalorder %v336_v55, 2  ;;  %vm338_vm6 = vcmp.eq.s32.totalorder %v336_v55, 0 }
  0x6a   :  { %v312_v26 = vmul.f32 %v311_v17, %v309_v22  ;;  %vm337_vm7 = vcmp.lt.s32.totalorder %v336_v55, 2 }
  0x6b   :  { %v178_v27 = vmul.f32 %v177_v25, %v162_v54  ;;  %v187_v30 = vxor.u32 2147483648, %v170_v59 }
  0x6c   :  { %v313_v63 = vxor.u32 2147483648, %v312_v26 }
  0x6d   :  { %v184_v6 = vxor.u32 2147483648, %v178_v27  ;;  %v188_v34 = vsel %vm186_vm15, %v187_v30, %v178_v27 }
  0x6e   :  { %v314_v36 = vsel %vm193_vm0, %v313_v63, %v312_v26 }
  0x6f   :  { %v185_v40 = vsel %vm183_vm1, %v170_v59, %v184_v6  ;;  %v317_v12 = vsel %vm653_vm2, %v486_v9, %v314_v36 }
  0x70   :  { %v189_v44 = vsel %vm182_vm3, %v185_v40, %v188_v34  ;;  %v319_v45 = vmul.f32 %v317_v12, %v317_v12 }
  0x71   :  { %v190_v35 = vsel %vm179_vm4, nan, %v189_v44 }
  0x72   :  { %v320_v8 = vmul.f32 -0.001358992, %v319_v45  ;;  %v327_v47 = vmul.f32 -0.00019511016, %v319_v45  ;;  %v368_v49 = vmul.f32 %v364_v38, %v190_v35 }
  0x74   :  { %v321_v51 = vadd.f32 0.041655596, %v320_v8  ;;  %v328_v31 = vadd.f32 0.008332121, %v327_v47  ;;  %370 = vst [vmem:[#allocation5] sm:$0xff] %v368_v49 }
  0x76   :  { %v322_v52 = vmul.f32 %v321_v51, %v319_v45  ;;  %v329_v54 = vmul.f32 %v328_v31, %v319_v45 }
  0x78   :  { %v323_v32 = vadd.f32 -0.4999988, %v322_v52  ;;  %v330_v46 = vadd.f32 -0.16666654, %v329_v54 }
  0x7a   :  { %v324_v56 = vmul.f32 %v323_v32, %v319_v45  ;;  %v331_v10 = vmul.f32 %v330_v46, %v319_v45 }
  0x7c   :  { %v325_v57 = vadd.f32 1.0, %v324_v56  ;;  %v332_v18 = vadd.f32 1.0, %v331_v10 }
  0x7e   :  { %v333_v37 = vmul.f32 %v332_v18, %v317_v12  ;;  %v342_v58 = vxor.u32 2147483648, %v325_v57 }
  0x80   :  { %v339_v60 = vxor.u32 2147483648, %v333_v37  ;;  %v343_v61 = vsel %vm341_vm5, %v342_v58, %v333_v37 }
  0x82   :  { %v340_v41 = vsel %vm338_vm6, %v325_v57, %v339_v60 }
  0x83   :  { %v344_v0 = vsel %vm337_vm7, %v340_v41, %v343_v61 }
  0x84   :  { %v345_v29 = vsel %vm334_vm8, nan, %v344_v0 }
  0x85   :  { %v369_v19 = vmul.f32 %v365_v62, %v345_v29 }
  0x87   :  { %371 = vst [vmem:[#allocation5 + $0x8] sm:$0xff] %v369_v19 }
  0x88   :  { %382 = dma.vmem_to_hbm [thread:$0]  %s378_s11, 256, %s380_s14, [#allocation4]  }
  0x89   :  { %456 = dma.done.wait [#allocation4], 256  }
  0x8a   :  { %457 = vsyncadd [#allocation4], 4294967040 }
  0x8b   :  { %387 = vsyncpa [#allocation3], 1 }
  0x8c   :  { %388 = vsyncpa [#allocation4], 1 }

</bundles_post_ra>
